<compile_context>
chip_gen: v5e
topology: v5e:2x2
jax: 0.10.0
libtpu: 0.0.40
codegen_flags: <defaults>
</compile_context>

<pallas_src>
import jax
import jax.numpy as jnp
from jax import lax
from jax.experimental import pallas as pl
from jax.experimental.pallas import tpu as pltpu

_LOG_CLAMP = -100.0          # F.binary_cross_entropy clamps log() at -100
_N_STATS = 7                 # mask, x*m, y*m, x^2*m, y^2*m, bce, bce_under
_N_SPLIT = 2                 # outer "parallel" grid axis (v7x: one slab per TC)
_MAX_ROW_TILE = 2048


def _cdiv(a, b):
    return -(-a // b)


def _round_up(x, m):
    return _cdiv(x, m) * m


def _hw_budget():
    """(max bytes per f32 input block, vmem_limit_bytes) per TPU generation."""
    kind = ""
    try:
        kind = jax.devices()[0].device_kind.lower()
    except Exception:
        pass
    for tag in ("v4", "v5", "v6"):
        if tag in kind:
            return 8 << 20, 96 << 20     # 128 MiB physical VMEM: go big
    return 4 << 20, 48 << 20             # v7x-safe default (64 MiB per TC)


def _plan_tiles(h, w, max_block_bytes):
    """Row-block plan: (row_tile, blocks_per_split, n_split)."""
    h32 = _round_up(h, 32)
    n_split = _N_SPLIT if h32 >= 32 * _N_SPLIT else 1
    rows_per_split = _round_up(_cdiv(h32, n_split), 32)
    row_cap = max(32, min(_MAX_ROW_TILE,
                          (max_block_bytes // (4 * max(w, 1))) // 32 * 32))
    # >= 2 blocks per split (when there are enough rows) so DMA overlaps compute.
    min_bps = 2 if rows_per_split >= 64 else 1
    bps = max(min_bps, _cdiv(rows_per_split, row_cap))
    row_tile = _round_up(_cdiv(rows_per_split, bps), 32)
    return row_tile, bps, n_split


def _clean_ref_depth(rd):
    # torch.nan_to_num(rd, 0, 0, 0) followed by clip(0, 10000)
    rd = jnp.where(jnp.isnan(rd) | jnp.isinf(rd), 0.0, rd)
    return jnp.clip(rd, 0.0, 10000.0)


def _make_stats_kernel(h, w, row_tile, bps, need_row_mask):
    """Pass 1: masked log-depth moments + merged alpha-BCE partial sums."""
    n_strips = row_tile // 8

    def kernel(ref_ref, pred_ref, palpha_ref, out_ref):
        @pl.when(pl.program_id(1) == 0)
        def _init():
            out_ref[...] = jnp.zeros_like(out_ref)

        row0 = (pl.program_id(0) * bps + pl.program_id(1)) * row_tile

        def body(s, carry):
            r = pl.multiple_of(s * 8, 8)
            rd = ref_ref[pl.ds(r, 8), :].astype(jnp.float32)
            pd = pred_ref[pl.ds(r, 8), :].astype(jnp.float32)
            pa = palpha_ref[pl.ds(r, 8), :].astype(jnp.float32)
            if need_row_mask:
                rows = row0 + r + lax.broadcasted_iota(jnp.int32, (8, w), 0)
                valid = rows < h
                rd = jnp.where(valid, rd, 0.0)   # mask == 0 on tail rows
                pd = jnp.where(valid, pd, 1.0)   # keep logs finite (no NaN*0)
                pa = jnp.where(valid, pa, 0.0)   # BCE contribution == 0
            rd = _clean_ref_depth(rd)
            m = (rd > 0.0).astype(jnp.float32)
            xlog = jnp.log(rd + 1e-6)                       # rd clipped >= 0
            ylog = jnp.log(jnp.maximum(pd, 0.0) + 1e-6)
            # torch.fmax(pred_alpha, m): NaN alpha falls back to the mask value.
            pa = jnp.where(jnp.isnan(pa), m, pa)
            # Both asymmetric BCE terms share a single log:
            #   m==0 -> -log(1-pa) feeds bce,   m==1 -> -log(pa) feeds bce_under
            p = jnp.where(m > 0.0, pa, 1.0 - pa)
            l = -jnp.maximum(jnp.log(p), _LOG_CLAMP)
            xm = xlog * m
            ym = ylog * m
            out_ref[0, :, :] += m
            out_ref[1, :, :] += xm
            out_ref[2, :, :] += ym
            out_ref[3, :, :] += xlog * xm
            out_ref[4, :, :] += ylog * ym
            out_ref[5, :, :] += (1.0 - m) * l
            out_ref[6, :, :] += m * l
            return carry

        lax.fori_loop(0, n_strips, body, 0)

    return kernel


def _make_depth_kernel(h, w, row_tile, bps, need_row_mask):
    """Pass 2: sum(|x_norm - y_norm| * mask) with normalization folded into
    3 SMEM scalars: [inv_std_x, inv_std_y, c0 = mx*isx - my*isy]."""
    n_strips = row_tile // 8

    def kernel(params_ref, ref_ref, pred_ref, out_ref):
        inv_sx = params_ref[0]
        inv_sy = params_ref[1]
        c0 = params_ref[2]

        @pl.when(pl.program_id(1) == 0)
        def _init():
            out_ref[...] = jnp.zeros_like(out_ref)

        row0 = (pl.program_id(0) * bps + pl.program_id(1)) * row_tile

        def body(s, carry):
            r = pl.multiple_of(s * 8, 8)
            rd = ref_ref[pl.ds(r, 8), :].astype(jnp.float32)
            pd = pred_ref[pl.ds(r, 8), :].astype(jnp.float32)
            if need_row_mask:
                rows = row0 + r + lax.broadcasted_iota(jnp.int32, (8, w), 0)
                valid = rows < h
                rd = jnp.where(valid, rd, 0.0)
                pd = jnp.where(valid, pd, 1.0)
            rd = _clean_ref_depth(rd)
            m = (rd > 0.0).astype(jnp.float32)
            xlog = jnp.log(rd + 1e-6)
            ylog = jnp.log(jnp.maximum(pd, 0.0) + 1e-6)
            out_ref[...] += jnp.abs(xlog * inv_sx - ylog * inv_sy - c0) * m
            return carry

        lax.fori_loop(0, n_strips, body, 0)

    return kernel


def supervision_losses(ref_depth, pred_depth, pred_normal, pred_alpha, *,
                       depth_weight=1.0, normal_weight=0.0,
                       alpha_weight=1.0, alpha_weight_under=0.5):
    h, w = pred_depth.shape[:2]
    max_block_bytes, vmem_limit = _hw_budget()
    row_tile, bps, n_split = _plan_tiles(h, w, max_block_bytes)
    need_row_mask = row_tile * bps * n_split != h

    # No jnp.pad pass: squeeze the trailing channel dim (free) and stream the
    # raw (h, w) slabs; ragged tail rows are masked in-kernel.
    rd = ref_depth.reshape(h, w)
    pd = pred_depth.reshape(h, w)
    pa = pred_alpha.reshape(h, w)
    del pred_normal  # TODO(synk): needs depth_to_normal(ref, camera) helper

    grid = (n_split, bps)
    tile = pl.BlockSpec((row_tile, w), lambda c, i: (c * bps + i, 0))
    cparams = pltpu.CompilerParams(
        dimension_semantics=("parallel", "arbitrary"),
        vmem_limit_bytes=vmem_limit)

    # ---- pass 1: masked log-depth moments + alpha BCE partial sums ---------
    stats = pl.pallas_call(
        _make_stats_kernel(h, w, row_tile, bps, need_row_mask),
        out_shape=jax.ShapeDtypeStruct((n_split * _N_STATS, 8, w), jnp.float32),
        grid_spec=pltpu.PrefetchScalarGridSpec(
            num_scalar_prefetch=0, grid=grid,
            in_specs=[tile, tile, tile],
            out_specs=pl.BlockSpec((_N_STATS, 8, w), lambda c, i: (c, 0, 0))),
        compiler_params=cparams,
    )(rd, pd, pa)

    sums = stats.reshape(n_split, _N_STATS, 8, w).sum(axis=(0, 2, 3))
    m_sum = jnp.maximum(sums[0], 1.0)                     # fully-masked guard
    mean_x = sums[1] / m_sum
    mean_y = sums[2] / m_sum
    # E[x^2]-E[x]^2 can cancel to <=0 in f32; clamp so rsqrt stays finite.
    var_x = jnp.maximum(sums[3] / m_sum - mean_x * mean_x, 1e-12)
    var_y = jnp.maximum(sums[4] / m_sum - mean_y * mean_y, 1e-12)
    inv_sx = lax.rsqrt(var_x)
    inv_sy = lax.rsqrt(var_y)
    n_pix = float(h * w)

    if depth_weight > 0.0:
        c0 = mean_x * inv_sx - mean_y * inv_sy
        params = jnp.stack([inv_sx, inv_sy, c0]).astype(jnp.float32)
        # ---- pass 2: sum(|x_norm - y_norm| * mask) --------------------------
        depth_acc = pl.pallas_call(
            _make_depth_kernel(h, w, row_tile, bps, need_row_mask),
            out_shape=jax.ShapeDtypeStruct((n_split * 8, w), jnp.float32),
            grid_spec=pltpu.PrefetchScalarGridSpec(
                num_scalar_prefetch=0, grid=grid,
                in_specs=[pl.BlockSpec(memory_space=pltpu.MemorySpace.SMEM),
                          tile, tile],
                out_specs=pl.BlockSpec((8, w), lambda c, i: (c, 0))),
            compiler_params=cparams,
        )(params, rd, pd)
        depth_loss = depth_acc.sum() / n_pix
    else:
        depth_loss = jnp.float32(0.0)

    normal_loss = jnp.float32(0.0)  # TODO(synk): normal branch needs depth_to_normal

    alpha_loss = sums[5] / n_pix
    alpha_loss_over = (sums[6] / n_pix) if alpha_weight_under > 0.0 \
        else jnp.float32(0.0)

    return (jnp.asarray(depth_weight * depth_loss, jnp.float32),
            jnp.asarray(normal_weight * normal_loss, jnp.float32),
            jnp.asarray(alpha_weight * alpha_loss
                        + alpha_weight_under * alpha_loss_over, jnp.float32))


def _reference(ref_depth, pred_depth, pred_alpha, *, depth_weight, normal_weight,
               alpha_weight, alpha_weight_under):
    # Pure-JAX transcription of the PyTorch forward (degree < 0 branch).
    rd = _clean_ref_depth(ref_depth.astype(jnp.float32))
    h, w, _ = pred_depth.shape
    alpha_hw = rd > 0.0
    rd = jnp.where(alpha_hw, rd, 2.0 * jnp.max(rd))
    alpha = alpha_hw[..., 0]
    x = rd.reshape(-1)
    y = pred_depth.astype(jnp.float32).reshape(-1)
    m = alpha.reshape(-1).astype(jnp.float32)
    m_sum = m.sum()
    x = jnp.log(jnp.maximum(x, 0.0) + 1e-6)
    y = jnp.log(jnp.maximum(y, 0.0) + 1e-6)
    x = x - (x * m).sum() / m_sum
    y = y - (y * m).sum() / m_sum
    x = x / jnp.sqrt((x * x * m).sum() / m_sum)
    y = y / jnp.sqrt((y * y * m).sum() / m_sum)
    depth_loss = jnp.mean(jnp.abs((x - y).reshape(h, w)) * alpha)

    pa = pred_alpha.astype(jnp.float32).reshape(-1)
    a = alpha.astype(jnp.float32).reshape(-1)

    def bce(xv, yv):
        p = jnp.maximum(xv, yv)
        return jnp.mean(-(yv * jnp.maximum(jnp.log(p), _LOG_CLAMP)
                          + (1.0 - yv) * jnp.maximum(jnp.log(1.0 - p), _LOG_CLAMP)))

    alpha_loss = bce(pa, a)
    alpha_loss_over = bce(1.0 - pa, 1.0 - a)
    return (depth_weight * depth_loss,
            jnp.float32(0.0) * normal_weight,
            alpha_weight * alpha_loss + alpha_weight_under * alpha_loss_over)


if __name__ == "__main__":
    key = jax.random.PRNGKey(0)
    H = W = 16
    k1, k2, k3, k4 = jax.random.split(key, 4)

    ref_depth = jax.random.uniform(k1, (H, W, 1), jnp.float32, 0.5, 5.0)
    holes = jax.random.uniform(k2, (H, W, 1)) < 0.2
    ref_depth = jnp.where(holes, 0.0, ref_depth)
    # one NaN and one +inf pixel to exercise nan_to_num / clip handling
    ref_depth = ref_depth.at[0, 0, 0].set(jnp.nan).at[0, 1, 0].set(jnp.inf)

    pred_depth = ref_depth * (1.0 + 0.1 * jax.random.normal(k3, (H, W, 1))) + 0.05
    pred_depth = jnp.where(jnp.isfinite(pred_depth), pred_depth, 1.0)
    pred_depth = jnp.maximum(pred_depth, 1e-3)

    pred_normal = jnp.zeros((H, W, 3), jnp.float32)  # unused (normal_weight=0)
    pred_alpha = jax.nn.sigmoid(2.0 * jax.random.normal(k4, (H, W, 1)))

    cfg = dict(depth_weight=1.0, normal_weight=0.0,
               alpha_weight=1.0, alpha_weight_under=0.5)

    out = supervision_losses(ref_depth, pred_depth, pred_normal, pred_alpha, **cfg)
    out = jax.block_until_ready(out)

    ref = _reference(ref_depth, pred_depth, pred_alpha, **cfg)
    for o, r in zip(out, ref):
        assert jnp.allclose(jnp.asarray(o), jnp.asarray(r),
                            rtol=2e-3, atol=1e-5), (o, r)

    print("KERNEL_OK")
</pallas_src>

<mosaic_0001>
module attributes {stable_mosaic.version = 11 : i64} {
  func.func @kernel(%arg0: i32, %arg1: i32, %arg2: memref<32x16xf32, #tpu.memory_space<vmem>>, %arg3: memref<32x16xf32, #tpu.memory_space<vmem>>, %arg4: memref<32x16xf32, #tpu.memory_space<vmem>>, %arg5: memref<7x8x16xf32, #tpu.memory_space<vmem>>) attributes {dimension_semantics = [#tpu.dimension_semantics<parallel>, #tpu.dimension_semantics<arbitrary>], iteration_bounds = array<i64: 1, 1>, scalar_prefetch = 0 : i64, scratch_operands = 0 : i64, tpu.core_type = #tpu.core_type<tc>, window_params = [{transform_indices = @transform_0, window_bounds = array<i64: 32, 16>}, {transform_indices = @transform_1, window_bounds = array<i64: 32, 16>}, {transform_indices = @transform_2, window_bounds = array<i64: 32, 16>}, {transform_indices = @transform_3, window_bounds = array<i64: 7, 8, 16>}]} {
    %c0_i32 = arith.constant 0 : i32
    %0 = arith.cmpi eq, %arg1, %c0_i32 : i32
    %1 = arith.extui %0 : i1 to i32
    %c0_i32_0 = arith.constant 0 : i32
    %2 = arith.cmpi ne, %1, %c0_i32_0 : i32
    scf.if %2 {
      %cst = arith.constant 0.000000e+00 : f32
      %7 = vector.broadcast %cst : f32 to vector<7x8x16xf32>
      %c0 = arith.constant 0 : index
      %c0_4 = arith.constant 0 : index
      %c0_5 = arith.constant 0 : index
      %8 = vector.load %arg5[%c0, %c0_4, %c0_5] : memref<7x8x16xf32, #tpu.memory_space<vmem>>, vector<7x8x16xf32>
      tpu.vector_store %arg5[%c0, %c0_4, %c0_5], %7 {strides = array<i32>} : memref<7x8x16xf32, #tpu.memory_space<vmem>>, vector<7x8x16xf32>,
    } else {
    }
    %c1_i32 = arith.constant 1 : i32
    %3 = arith.muli %arg0, %c1_i32 : i32
    %4 = arith.addi %3, %arg1 : i32
    %c32_i32 = arith.constant 32 : i32
    %5 = arith.muli %4, %c32_i32 : i32
    %c0_i32_1 = arith.constant 0 : i32
    %c4_i32 = arith.constant 4 : i32
    %6 = arith.addi %c0_i32_1, %c4_i32 : i32
    %c1_i32_2 = arith.constant 1 : i32
    scf.for %arg6 = %c0_i32_1 to %6 step %c1_i32_2  : i32 {
      %c8_i32 = arith.constant 8 : i32
      %7 = arith.muli %arg6, %c8_i32 : i32
      %8 = tpu.assume_multiple %7, 8 : i32
      %9 = arith.index_cast %8 : i32 to index
      %c0 = arith.constant 0 : index
      %10 = vector.load %arg2[%9, %c0] : memref<32x16xf32, #tpu.memory_space<vmem>>, vector<8x16xf32>
      %11 = arith.index_cast %8 : i32 to index
      %c0_4 = arith.constant 0 : index
      %12 = vector.load %arg3[%11, %c0_4] : memref<32x16xf32, #tpu.memory_space<vmem>>, vector<8x16xf32>
      %13 = arith.index_cast %8 : i32 to index
      %c0_5 = arith.constant 0 : index
      %14 = vector.load %arg4[%13, %c0_5] : memref<32x16xf32, #tpu.memory_space<vmem>>, vector<8x16xf32>
      %15 = arith.addi %5, %8 : i32
      %16 = tpu.iota {dimensions = array<i32: 0>} : vector<8x16xi32>
      %17 = vector.broadcast %15 : i32 to vector<8x16xi32>
      %18 = arith.addi %17, %16 : vector<8x16xi32>
      %c16_i32 = arith.constant 16 : i32
      %19 = vector.broadcast %c16_i32 : i32 to vector<8x16xi32>
      %20 = arith.cmpi slt, %18, %19 : vector<8x16xi32>
      %cst = arith.constant 0.000000e+00 : f32
      %21 = vector.broadcast %cst : f32 to vector<8x16xf32>
      %22 = arith.select %20, %10, %21 : vector<8x16xi1>, vector<8x16xf32>
      %cst_6 = arith.constant 1.000000e+00 : f32
      %23 = vector.broadcast %cst_6 : f32 to vector<8x16xf32>
      %24 = arith.select %20, %12, %23 : vector<8x16xi1>, vector<8x16xf32>
      %cst_7 = arith.constant 0.000000e+00 : f32
      %25 = vector.broadcast %cst_7 : f32 to vector<8x16xf32>
      %26 = arith.select %20, %14, %25 : vector<8x16xi1>, vector<8x16xf32>
      %27 = arith.cmpf one, %22, %22 : vector<8x16xf32>
      %28 = math.absf %22 : vector<8x16xf32>
      %cst_8 = arith.constant 0x7F800000 : f32
      %29 = vector.broadcast %cst_8 : f32 to vector<8x16xf32>
      %30 = arith.cmpf oeq, %28, %29 : vector<8x16xf32>
      %31 = arith.ori %27, %30 : vector<8x16xi1>
      %cst_9 = arith.constant 0.000000e+00 : f32
      %32 = vector.broadcast %cst_9 : f32 to vector<8x16xf32>
      %33 = arith.select %31, %32, %22 : vector<8x16xi1>, vector<8x16xf32>
      %cst_10 = arith.constant 0.000000e+00 : f32
      %cst_11 = arith.constant 1.000000e+04 : f32
      %34 = vector.broadcast %cst_10 : f32 to vector<8x16xf32>
      %35 = arith.maximumf %34, %33 : vector<8x16xf32>
      %36 = vector.broadcast %cst_11 : f32 to vector<8x16xf32>
      %37 = arith.minimumf %36, %35 : vector<8x16xf32>
      %cst_12 = arith.constant 0.000000e+00 : f32
      %38 = vector.broadcast %cst_12 : f32 to vector<8x16xf32>
      %39 = arith.cmpf ogt, %37, %38 : vector<8x16xf32>
      %40 = arith.extui %39 : vector<8x16xi1> to vector<8x16xi32>
      %41 = arith.sitofp %40 : vector<8x16xi32> to vector<8x16xf32>
      %cst_13 = arith.constant 9.99999997E-7 : f32
      %42 = vector.broadcast %cst_13 : f32 to vector<8x16xf32>
      %43 = arith.addf %37, %42 : vector<8x16xf32>
      %44 = math.log %43 : vector<8x16xf32>
      %cst_14 = arith.constant 0.000000e+00 : f32
      %45 = vector.broadcast %cst_14 : f32 to vector<8x16xf32>
      %46 = arith.maximumf %24, %45 : vector<8x16xf32>
      %cst_15 = arith.constant 9.99999997E-7 : f32
      %47 = vector.broadcast %cst_15 : f32 to vector<8x16xf32>
      %48 = arith.addf %46, %47 : vector<8x16xf32>
      %49 = math.log %48 : vector<8x16xf32>
      %50 = arith.cmpf one, %26, %26 : vector<8x16xf32>
      %51 = arith.select %50, %41, %26 : vector<8x16xi1>, vector<8x16xf32>
      %cst_16 = arith.constant 0.000000e+00 : f32
      %52 = vector.broadcast %cst_16 : f32 to vector<8x16xf32>
      %53 = arith.cmpf ogt, %41, %52 : vector<8x16xf32>
      %cst_17 = arith.constant 1.000000e+00 : f32
      %54 = vector.broadcast %cst_17 : f32 to vector<8x16xf32>
      %55 = arith.subf %54, %51 : vector<8x16xf32>
      %56 = arith.select %53, %51, %55 : vector<8x16xi1>, vector<8x16xf32>
      %57 = math.log %56 : vector<8x16xf32>
      %cst_18 = arith.constant -1.000000e+02 : f32
      %58 = vector.broadcast %cst_18 : f32 to vector<8x16xf32>
      %59 = arith.maximumf %57, %58 : vector<8x16xf32>
      %cst_19 = arith.constant 0.000000e+00 : f32
      %60 = vector.broadcast %cst_19 : f32 to vector<8x16xf32>
      %61 = arith.subf %60, %59 : vector<8x16xf32>
      %62 = arith.mulf %44, %41 : vector<8x16xf32>
      %63 = arith.mulf %49, %41 : vector<8x16xf32>
      %c0_20 = arith.constant 0 : index
      %c0_21 = arith.constant 0 : index
      %c0_22 = arith.constant 0 : index
      %64 = vector.load %arg5[%c0_20, %c0_21, %c0_22] : memref<7x8x16xf32, #tpu.memory_space<vmem>>, vector<1x8x16xf32>
      %65 = vector.shape_cast %64 : vector<1x8x16xf32> to vector<8x16xf32>
      %66 = arith.addf %65, %41 : vector<8x16xf32>
      %c0_23 = arith.constant 0 : index
      %c0_24 = arith.constant 0 : index
      %c0_25 = arith.constant 0 : index
      %67 = vector.load %arg5[%c0_23, %c0_24, %c0_25] : memref<7x8x16xf32, #tpu.memory_space<vmem>>, vector<1x8x16xf32>
      %68 = vector.shape_cast %67 : vector<1x8x16xf32> to vector<8x16xf32>
      %69 = vector.shape_cast %66 : vector<8x16xf32> to vector<1x8x16xf32>
      tpu.vector_store %arg5[%c0_23, %c0_24, %c0_25], %69 {strides = array<i32>} : memref<7x8x16xf32, #tpu.memory_space<vmem>>, vector<1x8x16xf32>,
      %c1 = arith.constant 1 : index
      %c0_26 = arith.constant 0 : index
      %c0_27 = arith.constant 0 : index
      %70 = vector.load %arg5[%c1, %c0_26, %c0_27] : memref<7x8x16xf32, #tpu.memory_space<vmem>>, vector<1x8x16xf32>
      %71 = vector.shape_cast %70 : vector<1x8x16xf32> to vector<8x16xf32>
      %72 = arith.addf %71, %62 : vector<8x16xf32>
      %c1_28 = arith.constant 1 : index
      %c0_29 = arith.constant 0 : index
      %c0_30 = arith.constant 0 : index
      %73 = vector.load %arg5[%c1_28, %c0_29, %c0_30] : memref<7x8x16xf32, #tpu.memory_space<vmem>>, vector<1x8x16xf32>
      %74 = vector.shape_cast %73 : vector<1x8x16xf32> to vector<8x16xf32>
      %75 = vector.shape_cast %72 : vector<8x16xf32> to vector<1x8x16xf32>
      tpu.vector_store %arg5[%c1_28, %c0_29, %c0_30], %75 {strides = array<i32>} : memref<7x8x16xf32, #tpu.memory_space<vmem>>, vector<1x8x16xf32>,
      %c2 = arith.constant 2 : index
      %c0_31 = arith.constant 0 : index
      %c0_32 = arith.constant 0 : index
      %76 = vector.load %arg5[%c2, %c0_31, %c0_32] : memref<7x8x16xf32, #tpu.memory_space<vmem>>, vector<1x8x16xf32>
      %77 = vector.shape_cast %76 : vector<1x8x16xf32> to vector<8x16xf32>
      %78 = arith.addf %77, %63 : vector<8x16xf32>
      %c2_33 = arith.constant 2 : index
      %c0_34 = arith.constant 0 : index
      %c0_35 = arith.constant 0 : index
      %79 = vector.load %arg5[%c2_33, %c0_34, %c0_35] : memref<7x8x16xf32, #tpu.memory_space<vmem>>, vector<1x8x16xf32>
      %80 = vector.shape_cast %79 : vector<1x8x16xf32> to vector<8x16xf32>
      %81 = vector.shape_cast %78 : vector<8x16xf32> to vector<1x8x16xf32>
      tpu.vector_store %arg5[%c2_33, %c0_34, %c0_35], %81 {strides = array<i32>} : memref<7x8x16xf32, #tpu.memory_space<vmem>>, vector<1x8x16xf32>,
      %c3 = arith.constant 3 : index
      %c0_36 = arith.constant 0 : index
      %c0_37 = arith.constant 0 : index
      %82 = vector.load %arg5[%c3, %c0_36, %c0_37] : memref<7x8x16xf32, #tpu.memory_space<vmem>>, vector<1x8x16xf32>
      %83 = vector.shape_cast %82 : vector<1x8x16xf32> to vector<8x16xf32>
      %84 = arith.mulf %44, %62 : vector<8x16xf32>
      %85 = arith.addf %83, %84 : vector<8x16xf32>
      %c3_38 = arith.constant 3 : index
      %c0_39 = arith.constant 0 : index
      %c0_40 = arith.constant 0 : index
      %86 = vector.load %arg5[%c3_38, %c0_39, %c0_40] : memref<7x8x16xf32, #tpu.memory_space<vmem>>, vector<1x8x16xf32>
      %87 = vector.shape_cast %86 : vector<1x8x16xf32> to vector<8x16xf32>
      %88 = vector.shape_cast %85 : vector<8x16xf32> to vector<1x8x16xf32>
      tpu.vector_store %arg5[%c3_38, %c0_39, %c0_40], %88 {strides = array<i32>} : memref<7x8x16xf32, #tpu.memory_space<vmem>>, vector<1x8x16xf32>,
      %c4 = arith.constant 4 : index
      %c0_41 = arith.constant 0 : index
      %c0_42 = arith.constant 0 : index
      %89 = vector.load %arg5[%c4, %c0_41, %c0_42] : memref<7x8x16xf32, #tpu.memory_space<vmem>>, vector<1x8x16xf32>
      %90 = vector.shape_cast %89 : vector<1x8x16xf32> to vector<8x16xf32>
      %91 = arith.mulf %49, %63 : vector<8x16xf32>
      %92 = arith.addf %90, %91 : vector<8x16xf32>
      %c4_43 = arith.constant 4 : index
      %c0_44 = arith.constant 0 : index
      %c0_45 = arith.constant 0 : index
      %93 = vector.load %arg5[%c4_43, %c0_44, %c0_45] : memref<7x8x16xf32, #tpu.memory_space<vmem>>, vector<1x8x16xf32>
      %94 = vector.shape_cast %93 : vector<1x8x16xf32> to vector<8x16xf32>
      %95 = vector.shape_cast %92 : vector<8x16xf32> to vector<1x8x16xf32>
      tpu.vector_store %arg5[%c4_43, %c0_44, %c0_45], %95 {strides = array<i32>} : memref<7x8x16xf32, #tpu.memory_space<vmem>>, vector<1x8x16xf32>,
      %c5 = arith.constant 5 : index
      %c0_46 = arith.constant 0 : index
      %c0_47 = arith.constant 0 : index
      %96 = vector.load %arg5[%c5, %c0_46, %c0_47] : memref<7x8x16xf32, #tpu.memory_space<vmem>>, vector<1x8x16xf32>
      %97 = vector.shape_cast %96 : vector<1x8x16xf32> to vector<8x16xf32>
      %cst_48 = arith.constant 1.000000e+00 : f32
      %98 = vector.broadcast %cst_48 : f32 to vector<8x16xf32>
      %99 = arith.subf %98, %41 : vector<8x16xf32>
      %100 = arith.mulf %99, %61 : vector<8x16xf32>
      %101 = arith.addf %97, %100 : vector<8x16xf32>
      %c5_49 = arith.constant 5 : index
      %c0_50 = arith.constant 0 : index
      %c0_51 = arith.constant 0 : index
      %102 = vector.load %arg5[%c5_49, %c0_50, %c0_51] : memref<7x8x16xf32, #tpu.memory_space<vmem>>, vector<1x8x16xf32>
      %103 = vector.shape_cast %102 : vector<1x8x16xf32> to vector<8x16xf32>
      %104 = vector.shape_cast %101 : vector<8x16xf32> to vector<1x8x16xf32>
      tpu.vector_store %arg5[%c5_49, %c0_50, %c0_51], %104 {strides = array<i32>} : memref<7x8x16xf32, #tpu.memory_space<vmem>>, vector<1x8x16xf32>,
      %c6 = arith.constant 6 : index
      %c0_52 = arith.constant 0 : index
      %c0_53 = arith.constant 0 : index
      %105 = vector.load %arg5[%c6, %c0_52, %c0_53] : memref<7x8x16xf32, #tpu.memory_space<vmem>>, vector<1x8x16xf32>
      %106 = vector.shape_cast %105 : vector<1x8x16xf32> to vector<8x16xf32>
      %107 = arith.mulf %41, %61 : vector<8x16xf32>
      %108 = arith.addf %106, %107 : vector<8x16xf32>
      %c6_54 = arith.constant 6 : index
      %c0_55 = arith.constant 0 : index
      %c0_56 = arith.constant 0 : index
      %109 = vector.load %arg5[%c6_54, %c0_55, %c0_56] : memref<7x8x16xf32, #tpu.memory_space<vmem>>, vector<1x8x16xf32>
      %110 = vector.shape_cast %109 : vector<1x8x16xf32> to vector<8x16xf32>
      %111 = vector.shape_cast %108 : vector<8x16xf32> to vector<1x8x16xf32>
      tpu.vector_store %arg5[%c6_54, %c0_55, %c0_56], %111 {strides = array<i32>} : memref<7x8x16xf32, #tpu.memory_space<vmem>>, vector<1x8x16xf32>,
    }
    %c4_i32_3 = arith.constant 4 : i32
    return
  }
  func.func @transform_0(%arg0: i32, %arg1: i32) -> (i32, i32) {
    %c1_i32 = arith.constant 1 : i32
    %0 = arith.muli %arg0, %c1_i32 : i32
    %1 = arith.addi %0, %arg1 : i32
    %c0_i32 = arith.constant 0 : i32
    %c0_i32_0 = arith.constant 0 : i32
    return %1, %c0_i32 : i32, i32
  }
  func.func @transform_1(%arg0: i32, %arg1: i32) -> (i32, i32) {
    %c1_i32 = arith.constant 1 : i32
    %0 = arith.muli %arg0, %c1_i32 : i32
    %1 = arith.addi %0, %arg1 : i32
    %c0_i32 = arith.constant 0 : i32
    %c0_i32_0 = arith.constant 0 : i32
    return %1, %c0_i32 : i32, i32
  }
  func.func @transform_2(%arg0: i32, %arg1: i32) -> (i32, i32) {
    %c1_i32 = arith.constant 1 : i32
    %0 = arith.muli %arg0, %c1_i32 : i32
    %1 = arith.addi %0, %arg1 : i32
    %c0_i32 = arith.constant 0 : i32
    %c0_i32_0 = arith.constant 0 : i32
    return %1, %c0_i32 : i32, i32
  }
  func.func @transform_3(%arg0: i32, %arg1: i32) -> (i32, i32, i32) {
    %c0_i32 = arith.constant 0 : i32
    %c0_i32_0 = arith.constant 0 : i32
    %c0_i32_1 = arith.constant 0 : i32
    return %arg0, %c0_i32, %c0_i32_0 : i32, i32, i32
  }
}

</mosaic_0001>

<bundles_post_ra>
// kernel: tpu_custom_call.1
= control target key start
LH: loop header
LB: loop body
LE: loop exit
PB: predicated region body
PF: predicated region fallthrough
CT: control target
= control target key end

     0   :  { %8 = vsyncpa [#allocation3], 0  ;;  %s438_s0 = inlined_call_operand.hbm [shape: f32[16,16], index: 0, kind: input, shape index: {}]   ;;  %s439_s1 = inlined_call_operand.hbm [shape: f32[16,16], index: 1, kind: input, shape index: {}]   ;;  %s440_s2 = inlined_call_operand.hbm [shape: f32[16,16], index: 2, kind: input, shape index: {}]   ;;  %s441_s3 = inlined_call_operand.hbm [shape: f32[7,8,16], index: 3, kind: output, shape index: {}]  }
   0x1   :  { %9 = vsyncpa [#allocation6], 0 }
   0x2   :  { %10 = vsyncpa [#allocation4], 0 }
   0x3   :  { %19 = vsyncadd [#allocation3], 256  ;;  %s24_s14 = sshll.u32 %s438_s0, 4  ;;  %s363_s15 = smov [#allocation2]   ;;  %s25_s14 = int_to_ptr.hbm [resolvable:$true] %s24_s14 }
   0x4   :  { %s26_s16 = sshll.u32 %s363_s15, 4  ;;  %s364_s17 = smov 128   ;;  %s27_s16 = int_to_ptr.vmem [resolvable:$true] %s26_s16 }
   0x5   :  { %s365_s18 = smov 8  }
   0x6   :  { %32 = dma.hbm_to_vmem [thread:$0]  %s25_s14, 256, %s27_s16, [#allocation3], %s364_s17, %s364_s17, %s365_s18  }
   0x7   :  { %41 = vsyncadd [#allocation6], 256  ;;  %s46_s21 = sshll.u32 %s439_s1, 4  ;;  %s366_s22 = smov [#allocation5]   ;;  %s47_s21 = int_to_ptr.hbm [resolvable:$true] %s46_s21 }
   0x8   :  { %s48_s23 = sshll.u32 %s366_s22, 4  ;;  %s49_s23 = int_to_ptr.vmem [resolvable:$true] %s48_s23 }
   0x9   :  { %54 = dma.hbm_to_vmem [thread:$0]  %s47_s21, 256, %s49_s23, [#allocation6], %s364_s17, %s364_s17, %s365_s18  }
   0xa   :  { %63 = vsyncadd [#allocation6], 256  ;;  %s68_s25 = sshll.u32 %s440_s2, 4  ;;  %s367_s26 = smov [#allocation7]   ;;  %s69_s25 = int_to_ptr.hbm [resolvable:$true] %s68_s25 }
   0xb   :  { %s70_s27 = sshll.u32 %s367_s26, 4  ;;  %s71_s27 = int_to_ptr.vmem [resolvable:$true] %s70_s27 }
   0xc   :  { %76 = dma.hbm_to_vmem [thread:$0]  %s69_s25, 256, %s71_s27, [#allocation6], %s364_s17, %s364_s17, %s365_s18  }
   0xd   :  { %353 = dma.done.wait [#allocation3], 512  }
   0xe   :  { %354 = vsyncadd [#allocation3], 4294966784 }
   0xf   :  { %355 = dma.done.wait [#allocation6], 1024  }
  0x10   :  { %356 = vsyncadd [#allocation6], 4294966272  ;;  %vm105_vm0 = vcmask 130048   ;;  %v368_v0 = vmov 0.0   ;;  %s416_s1 = smov 0  }
  0x11   :  { %106 = vst.msk [vmem:[#allocation8] sm:$0xff] %vm105_vm0, %v368_v0 }
  0x12   :  { %107 = vst.msk [vmem:[#allocation8 + $0x8] sm:$0xff] %vm105_vm0, %v368_v0 }
  0x13   :  { %108 = vst.msk [vmem:[#allocation8 + $0x10] sm:$0xff] %vm105_vm0, %v368_v0 }
  0x14   :  { %109 = vst.msk [vmem:[#allocation8 + $0x18] sm:$0xff] %vm105_vm0, %v368_v0 }
  0x15   :  { %110 = vst.msk [vmem:[#allocation8 + $0x20] sm:$0xff] %vm105_vm0, %v368_v0 }
  0x16   :  { %111 = vst.msk [vmem:[#allocation8 + $0x28] sm:$0xff] %vm105_vm0, %v368_v0 }
  0x17   :  { %112 = vst.msk [vmem:[#allocation8 + $0x30] sm:$0xff] %vm105_vm0, %v368_v0 }
  0x18 LB: > { %v129_v1 = vlaneseq  ;;  %s229_s2 = sshll.u32 %s361_s1, 3  ;;  %v165_v17 = vld [vmem:[#allocation8] sm:$0xff]  ;;  %v369_v20 = vmov 0.0   ;;  %s120_s1 = sadd.s32 1, %s361_s1   ;;  %s361_s1 = sphi %s416_s1, %s120_s1  }
  0x19   : > { %v131_v3 = vstv %s229_s2  ;;  %s122_s28 = scalar_lea.vmem [#allocation2], %s229_s2  ;;  %s124_s29 = scalar_lea.vmem [#allocation5], %s229_s2  ;;  %v170_v35 = vld [vmem:[#allocation8 + $0x8] sm:$0xff] }
  0x1a   : > { %v130_v2 = vshrl.u32 %v129_v1, 7  ;;  %v123_v4 = vld [vmem:[%s122_s28] sm:$0xff]  ;;  %s126_s30 = scalar_lea.vmem [#allocation7], %s229_s2  ;;  %v174_v25 = vld [vmem:[#allocation8 + $0x10] sm:$0xff]  ;;  %p117_p0 = scmp.ge.s32.totalorder %s120_s1, 4  }
  0x1b   : > { %v125_v6 = vld [vmem:[%s124_s29] sm:$0xff]  ;;  %v178_v38 = vld [vmem:[#allocation8 + $0x18] sm:$0xff]  ;;  %s204_s6 = sshll.u32 (%p117_p0), %s441_s3, 4  ;;  %s370_s7 = smov (%p117_p0), [#allocation8]   ;;  %s205_s6 = int_to_ptr.hbm [resolvable:$true] %s204_s6 }
  0x1c   : > { %v132_v5 = vadd.s32 %v131_v3, %v130_v2  ;;  %v127_v12 = vld [vmem:[%s126_s30] sm:$0xff]  ;;  %s202_s8 = sshll.u32 (%p117_p0), %s370_s7, 4  ;;  %s203_s8 = int_to_ptr.vmem [resolvable:$true] %s202_s8 }
  0x1d   : > { %v183_v28 = vld [vmem:[#allocation8 + $0x20] sm:$0xff]  ;;  %v188_v46 = vld [vmem:[#allocation8 + $0x28] sm:$0xff] }
  0x1e   : > { %vm133_vm1 = vcmp.lt.s32.totalorder %v132_v5, 16  ;;  %v194_v47 = vld [vmem:[#allocation8 + $0x30] sm:$0xff] }
  0x1f   : > { %v134_v7 = vsel %vm133_vm1, %v123_v4, 0.0  ;;  %v135_v8 = vsel %vm133_vm1, %v125_v6, 1.0  ;;  %v136_v15 = vsel %vm133_vm1, %v127_v12, 0.0 }
  0x20   : > { %vm137_vm2 = vcmp.ne.f32.partialorder %v134_v7, %v134_v7  ;;  %v138_v9 = vand.u32 2147483647, %v134_v7  ;;  %v150_v10 = vmax.f32 %v135_v8, 0.0  ;;  %vm154_vm5 = vcmp.ne.f32.partialorder %v136_v15, %v136_v15 }
  0x22   : > { %vm139_vm3 = vcmp.eq.f32.partialorder %v138_v9, inf  ;;  %v151_v11 = vadd.f32 1e-06, %v150_v10 }
  0x23   : > { %vm140_vm4 = vmor %vm137_vm2, %vm139_vm3 }
  0x24   : > { %v141_v13 = vsel %vm140_vm4, 0.0, %v134_v7  ;;  %247 = vlog2.f32 %v151_v11 }
  0x25   : > { %v142_v14 = vmax.f32 %v141_v13, 0.0 }
  0x27   : > { %v143_v16 = vmin.f32 %v142_v14, 10000.0 }
  0x29   : > { %vm144_vm6 = vcmp.gt.f32.partialorder %v143_v16, 0.0  ;;  %v147_v18 = vadd.f32 1e-06, %v143_v16 }
  0x2a   : > { %v248_v19 = vpop.eup %247  ;;  %v230_v21 = vsel %vm144_vm6, 1.0, %v369_v20 }
  0x2b   : > { %v166_v22 = vadd.f32 %v230_v21, %v165_v17  ;;  %249 = vlog2.f32 %v147_v18  ;;  %v153_v23 = vmul.f32 0.6931472, %v248_v19  ;;  %v155_v24 = vsel %vm154_vm5, %v230_v21, %v136_v15 }
  0x2c   : > { %vm156_vm7 = vcmp.gt.f32.partialorder %v230_v21, 0.0  ;;  %v157_v26 = vsub.f32 1.0, %v155_v24  ;;  %v189_v44 = vsub.f32 1.0, %v230_v21 }
  0x2d   : > { %168 = vst.msk [vmem:[#allocation8] sm:$0xff] %vm105_vm0, %v166_v22  ;;  %v164_v27 = vmul.f32 %v230_v21, %v153_v23 }
  0x2e   : > { %v158_v29 = vsel %vm156_vm7, %v155_v24, %v157_v26 }
  0x2f   : > { %v175_v30 = vadd.f32 %v174_v25, %v164_v27  ;;  %v184_v31 = vmul.f32 %v164_v27, %v153_v23  ;;  %251 = vlog2.f32 %v158_v29 }
  0x31   : > { %v250_v32 = vpop.eup %249  ;;  %176 = vst.msk [vmem:[#allocation8 + $0x10] sm:$0xff] %vm105_vm0, %v175_v30  ;;  %v185_v33 = vadd.f32 %v184_v31, %v183_v28 }
  0x32   : > { %v149_v34 = vmul.f32 0.6931472, %v250_v32 }
  0x33   : > { %186 = vst.msk [vmem:[#allocation8 + $0x20] sm:$0xff] %vm105_vm0, %v185_v33 }
  0x34   : > { %v163_v36 = vmul.f32 %v230_v21, %v149_v34 }
  0x35   : > { %v252_v37 = vpop.eup %251 }
  0x36   : > { %v171_v39 = vadd.f32 %v170_v35, %v163_v36  ;;  %v179_v40 = vmul.f32 %v163_v36, %v149_v34  ;;  %v160_v41 = vmul.f32 0.6931472, %v252_v37 }
  0x38   : > { %172 = vst.msk [vmem:[#allocation8 + $0x8] sm:$0xff] %vm105_vm0, %v171_v39  ;;  %v180_v42 = vadd.f32 %v179_v40, %v178_v38  ;;  %v161_v43 = vmax.f32 %v160_v41, -100.0 }
  0x3a   : > { %181 = vst.msk [vmem:[#allocation8 + $0x18] sm:$0xff] %vm105_vm0, %v180_v42  ;;  %v162_v45 = vsub.f32 0.0, %v161_v43 }
  0x3c   : > { %v190_v48 = vmul.f32 %v189_v44, %v162_v45  ;;  %v195_v49 = vmul.f32 %v230_v21, %v162_v45 }
  0x3d   :  { %119 = sbr.rel (!%p117_p0) target bundleno = 24 (0x18), region = 67 }
  0x3e   : > { %v191_v50 = vadd.f32 %v190_v48, %v188_v46  ;;  %v196_v51 = vadd.f32 %v195_v49, %v194_v47 }
  0x40   : > { %192 = vst.msk [vmem:[#allocation8 + $0x28] sm:$0xff] %vm105_vm0, %v191_v50 }
  0x41   : > { %197 = vst.msk [vmem:[#allocation8 + $0x30] sm:$0xff] %vm105_vm0, %v196_v51 }
  0x42   :  { %210 = dma.vmem_to_hbm [thread:$0]  %s203_s8, 896, %s205_s6, [#allocation4], %s364_s17, %s364_s17, %s365_s18  }
  0x43   :  { %357 = dma.done.wait [#allocation4], 896  }
  0x44   :  { %358 = vsyncadd [#allocation4], 4294966400 }
  0x45   :  { %215 = vsyncpa [#allocation3], 1 }
  0x46   :  { %216 = vsyncpa [#allocation6], 1 }
  0x47   :  { %217 = vsyncpa [#allocation4], 1 }

</bundles_post_ra>
